<compile_context>
chip_gen: v6e
topology: v6e:2x2x1
jax: 0.10.0
libtpu: 0.0.40
codegen_flags: <defaults>
</compile_context>

<pallas_src>
import functools

import jax
import jax.numpy as jnp
from jax import lax
from jax.experimental import pallas as pl
from jax.experimental.pallas import tpu as pltpu


def _basic_block_kernel(x_ref, w1_ref, w2_ref, b1_ref, b2_ref, o_ref, *, H):
  """One block = `imgs_per_block` whole images, slab layout.

  x_ref  : (R, W*Cin)          lane-dense input slab, R = imgs_per_block * H
  w1_ref : (W*Cin, W*C0)       block-diagonal 1x1-conv weight, BN1 scale folded
  w2_ref : (3*W*C0, W*C1)      stacked banded 3x3-conv weight (vertical taps
                               ky=0,1,2 stacked on K), BN2 scale folded
  b1_ref : (1, W*C0)           BN1 bias, tiled over W
  b2_ref : (1, W*C1)           BN2 bias, tiled over W
  o_ref  : (R, W*C1)           lane-dense output slab (C1 == Cin)
  """
  r = x_ref.shape[0]

  # conv1x1 + BN1 (scale pre-folded into w1) + LeakyReLU(0.1).
  h = jnp.dot(x_ref[...], w1_ref[...], preferred_element_type=jnp.float32)
  h = h + b1_ref[...]
  h = jnp.maximum(h, 0.1 * h)                               # (R, W*C0)

  # Per-image row index -> border masks for the vertical taps (zero padding).
  y = lax.broadcasted_iota(jnp.int32, h.shape, 0)
  if r > H:                                                 # static branch
    y = y % H

  # Vertical neighbours via sublane roll (XLU) + mask; cross-image rows and
  # the wrap land exactly on the masked border rows.
  h_up = jnp.where(y > 0, pltpu.roll(h, shift=1, axis=0), 0.0)           # h[i-1]
  h_dn = jnp.where(y < H - 1, pltpu.roll(h, shift=r - 1, axis=0), 0.0)   # h[i+1]

  # conv3x3 (pad=1): single fused MXU push, K = 3*W*C0.
  hcat = jnp.concatenate([h_up, h, h_dn], axis=1)           # (R, 3*W*C0)
  acc = jnp.dot(hcat, w2_ref[...], preferred_element_type=jnp.float32)

  # BN2 bias + LeakyReLU(0.1) + residual add (x re-read from VMEM here).
  out = acc + b2_ref[...]
  out = jnp.maximum(out, 0.1 * out)
  o_ref[...] = (out + x_ref[...]).astype(o_ref.dtype)


def _choose_images_per_block(N, H, rows_target=256):
  """Group images per block so each MXU push sees ~rows_target rows, while
  keeping >= 2 grid steps (megacore + DMA/compute overlap) when N >= 2."""
  per = max(1, min(max(1, rows_target // H), N if N < 2 else N // 2))
  while N % per:
    per -= 1
  return per


def basic_block_pallas(x_nhwc, w1, w2, bn1, bn2, eps=1e-5):
  """x_nhwc: (N,H,W,Cin). w1: (C0,Cin,1,1) torch OIHW, w2: (C1,C0,3,3)."""
  N, H, W, Cin = x_nhwc.shape
  C0 = w1.shape[0]
  C1 = w2.shape[0]
  assert C1 == Cin, "residual add requires planes[1] == inplanes"

  # ---- wrapper-side glue: fold BN into scale/bias, build structured weights.
  def fold(bn):
    gamma, beta, mean, var = bn
    scale = gamma / jnp.sqrt(var + eps)
    bias = beta - mean * scale
    return scale.astype(jnp.float32), bias.astype(jnp.float32)

  s1, b1 = fold(bn1)
  s2, b2 = fold(bn2)

  eye_w = jnp.eye(W, dtype=jnp.float32)

  # 1x1 conv as block-diagonal lane matmul; BN1 scale folded into out columns.
  w1_cc = jnp.transpose(w1[:, :, 0, 0], (1, 0)).astype(jnp.float32) * s1[None, :]
  w1_big = jnp.kron(eye_w, w1_cc)                            # (W*Cin, W*C0)

  # 3x3 conv: per vertical tap ky, a banded (W*C0, W*C1) matrix whose band
  # offset encodes the horizontal tap kx (borders -> zero padding for free).
  # The three taps are stacked on K so the kernel does a single fused matmul.
  shift_mats = [jnp.eye(W, k=1, dtype=jnp.float32),           # kx = 0 (x-1)
                eye_w,                                        # kx = 1 (x)
                jnp.eye(W, k=-1, dtype=jnp.float32)]          # kx = 2 (x+1)
  mats = []
  for ky in range(3):
    m = jnp.zeros((W * C0, W * C1), jnp.float32)
    for kx in range(3):
      blk = jnp.transpose(w2[:, :, ky, kx], (1, 0)).astype(jnp.float32) * s2[None, :]
      m = m + jnp.kron(shift_mats[kx], blk)
    mats.append(m)
  # K order must match jnp.concatenate([h_up, h, h_dn]) in the kernel:
  # h_up -> ky=0, h -> ky=1, h_dn -> ky=2.
  w2_big = jnp.concatenate(mats, axis=0)                     # (3*W*C0, W*C1)

  b1_slab = jnp.tile(b1, (W,)).reshape(1, W * C0)
  b2_slab = jnp.tile(b2, (W,)).reshape(1, W * C1)

  x_slab = x_nhwc.reshape(N * H, W * Cin)                    # lane-dense slab

  imgs_per_blk = _choose_images_per_block(N, H)
  R = imgs_per_blk * H
  grid = (N // imgs_per_blk,)

  kern = functools.partial(_basic_block_kernel, H=H)

  # Advisory cost estimate for XLA's scheduler around the custom call.
  flops = (2 * N * H * (W * Cin) * (W * C0)
           + 2 * N * H * (3 * W * C0) * (W * C1))
  bytes_accessed = 4 * (x_slab.size + N * H * W * C1 + w1_big.size
                        + w2_big.size + b1_slab.size + b2_slab.size)
  cost = pl.CostEstimate(flops=flops, transcendentals=0,
                         bytes_accessed=bytes_accessed)

  out_slab = pl.pallas_call(
      kern,
      out_shape=jax.ShapeDtypeStruct((N * H, W * C1), x_nhwc.dtype),
      grid_spec=pltpu.PrefetchScalarGridSpec(
          num_scalar_prefetch=0,
          grid=grid,                                         # images, parallel
          in_specs=[
              pl.BlockSpec((R, W * Cin), lambda n: (n, 0)),
              pl.BlockSpec((W * Cin, W * C0), lambda n: (0, 0)),
              pl.BlockSpec((3 * W * C0, W * C1), lambda n: (0, 0)),
              pl.BlockSpec((1, W * C0), lambda n: (0, 0)),
              pl.BlockSpec((1, W * C1), lambda n: (0, 0)),
          ],
          out_specs=pl.BlockSpec((R, W * C1), lambda n: (n, 0)),
      ),
      compiler_params=pltpu.CompilerParams(
          dimension_semantics=("parallel",),
          vmem_limit_bytes=32 << 20),
      cost_estimate=cost,
  )(x_slab, w1_big, w2_big, b1_slab, b2_slab)

  return out_slab.reshape(N, H, W, C1)


def basic_block_reference(x_nhwc, w1, w2, bn1, bn2, eps=1e-5):
  """Pure-JAX reference (NHWC) mirroring the PyTorch module in eval mode."""
  def bn_apply(h, bn):
    gamma, beta, mean, var = bn
    return (h - mean) / jnp.sqrt(var + eps) * gamma + beta

  lrelu = lambda h: jnp.where(h > 0, h, 0.1 * h)
  dn = ("NHWC", "HWIO", "NHWC")

  w1_hwio = jnp.transpose(w1, (2, 3, 1, 0))   # (1,1,Cin,C0)
  w2_hwio = jnp.transpose(w2, (2, 3, 1, 0))   # (3,3,C0,C1)

  h = lax.conv_general_dilated(x_nhwc, w1_hwio, (1, 1), "VALID",
                               dimension_numbers=dn)
  h = lrelu(bn_apply(h, bn1))
  h = lax.conv_general_dilated(h, w2_hwio, (1, 1), ((1, 1), (1, 1)),
                               dimension_numbers=dn)
  h = lrelu(bn_apply(h, bn2))
  return h + x_nhwc


if __name__ == "__main__":
  key = jax.random.PRNGKey(0)
  kx, kw1, kw2, kg1, kb1, km1, kv1, kg2, kb2, km2, kv2 = jax.random.split(key, 11)

  # BasicBlock(inplanes=8, planes=(4, 8)); small spatial / batch.
  N, Cin, H, W = 2, 8, 16, 16
  C0, C1 = 4, 8

  x_nchw = jax.random.normal(kx, (N, Cin, H, W), jnp.float32)  # PyTorch NCHW

  # Deterministic synthetic parameters (torch-layout conv weights: OIHW).
  w1 = 0.2 * jax.random.normal(kw1, (C0, Cin, 1, 1), jnp.float32)
  w2 = 0.1 * jax.random.normal(kw2, (C1, C0, 3, 3), jnp.float32)
  bn1 = (1.0 + 0.1 * jax.random.normal(kg1, (C0,), jnp.float32),          # gamma
         0.1 * jax.random.normal(kb1, (C0,), jnp.float32),                # beta
         0.1 * jax.random.normal(km1, (C0,), jnp.float32),                # mean
         1.0 + 0.1 * jnp.abs(jax.random.normal(kv1, (C0,), jnp.float32)))  # var
  bn2 = (1.0 + 0.1 * jax.random.normal(kg2, (C1,), jnp.float32),
         0.1 * jax.random.normal(kb2, (C1,), jnp.float32),
         0.1 * jax.random.normal(km2, (C1,), jnp.float32),
         1.0 + 0.1 * jnp.abs(jax.random.normal(kv2, (C1,), jnp.float32)))

  # NCHW -> NHWC at the boundary, back to NCHW on the way out.
  x_nhwc = jnp.transpose(x_nchw, (0, 2, 3, 1))
  out_nhwc = basic_block_pallas(x_nhwc, w1, w2, bn1, bn2)
  out_nchw = jnp.transpose(out_nhwc, (0, 3, 1, 2))
  jax.block_until_ready(out_nchw)

  ref_nhwc = basic_block_reference(x_nhwc, w1, w2, bn1, bn2)
  ref_nchw = jnp.transpose(ref_nhwc, (0, 3, 1, 2))

  assert out_nchw.shape == (N, Cin, H, W)
  assert jnp.allclose(out_nchw, ref_nchw, rtol=1e-4, atol=1e-4), (
      float(jnp.max(jnp.abs(out_nchw - ref_nchw))))

  print("KERNEL_OK")
</pallas_src>

<mosaic_0001>
module attributes {stable_mosaic.version = 11 : i64} {
  func.func @_basic_block_kernel(%arg0: i32, %arg1: memref<16x128xf32, #tpu.memory_space<vmem>>, %arg2: memref<128x64xf32, #tpu.memory_space<vmem>>, %arg3: memref<192x128xf32, #tpu.memory_space<vmem>>, %arg4: memref<1x64xf32, #tpu.memory_space<vmem>>, %arg5: memref<1x128xf32, #tpu.memory_space<vmem>>, %arg6: memref<16x128xf32, #tpu.memory_space<vmem>>) attributes {dimension_semantics = [#tpu.dimension_semantics<parallel>], iteration_bounds = array<i64: 2>, scalar_prefetch = 0 : i64, scratch_operands = 0 : i64, tpu.core_type = #tpu.core_type<tc>, window_params = [{transform_indices = @transform_0, window_bounds = array<i64: 16, 128>}, {pipeline_mode = #tpu.pipeline_mode<synchronous>, transform_indices = @transform_1, window_bounds = array<i64: 128, 64>}, {pipeline_mode = #tpu.pipeline_mode<synchronous>, transform_indices = @transform_2, window_bounds = array<i64: 192, 128>}, {pipeline_mode = #tpu.pipeline_mode<synchronous>, transform_indices = @transform_3, window_bounds = array<i64: 1, 64>}, {pipeline_mode = #tpu.pipeline_mode<synchronous>, transform_indices = @transform_4, window_bounds = array<i64: 1, 128>}, {transform_indices = @transform_5, window_bounds = array<i64: 16, 128>}]} {
    %c0 = arith.constant 0 : index
    %c0_0 = arith.constant 0 : index
    %0 = vector.load %arg1[%c0, %c0_0] : memref<16x128xf32, #tpu.memory_space<vmem>>, vector<16x128xf32>
    %c0_1 = arith.constant 0 : index
    %c0_2 = arith.constant 0 : index
    %1 = vector.load %arg2[%c0_1, %c0_2] : memref<128x64xf32, #tpu.memory_space<vmem>>, vector<128x64xf32>
    %cst = arith.constant dense<0.000000e+00> : vector<16x64xf32>
    %2 = tpu.matmul %0, %1, %cst {dimension_numbers = #tpu.dot_dimension_numbers<[1], [0], [0], [1], [0, 0, 1, 1], [], []>} : vector<16x128xf32>, vector<128x64xf32>, vector<16x64xf32> -> vector<16x64xf32>
    %c0_3 = arith.constant 0 : index
    %c0_4 = arith.constant 0 : index
    %3 = vector.load %arg4[%c0_3, %c0_4] : memref<1x64xf32, #tpu.memory_space<vmem>>, vector<1x64xf32>
    %4 = vector.broadcast %3 : vector<1x64xf32> to vector<16x64xf32>
    %5 = arith.addf %2, %4 : vector<16x64xf32>
    %cst_5 = arith.constant 1.000000e-01 : f32
    %6 = vector.broadcast %cst_5 : f32 to vector<16x64xf32>
    %7 = arith.mulf %6, %5 : vector<16x64xf32>
    %8 = arith.maximumf %5, %7 : vector<16x64xf32>
    %9 = tpu.iota {dimensions = array<i32: 0>} : vector<16x64xi32>
    %c0_i32 = arith.constant 0 : i32
    %10 = vector.broadcast %c0_i32 : i32 to vector<16x64xi32>
    %11 = arith.cmpi sgt, %9, %10 : vector<16x64xi32>
    %c1_i32 = arith.constant 1 : i32
    %12 = tpu.dynamic_rotate %8 by %c1_i32 dim 0 : vector<16x64xf32>, i32 -> vector<16x64xf32>
    %cst_6 = arith.constant 0.000000e+00 : f32
    %13 = vector.broadcast %cst_6 : f32 to vector<16x64xf32>
    %14 = arith.select %11, %12, %13 : vector<16x64xi1>, vector<16x64xf32>
    %c15_i32 = arith.constant 15 : i32
    %15 = vector.broadcast %c15_i32 : i32 to vector<16x64xi32>
    %16 = arith.cmpi slt, %9, %15 : vector<16x64xi32>
    %c15_i32_7 = arith.constant 15 : i32
    %17 = tpu.dynamic_rotate %8 by %c15_i32_7 dim 0 : vector<16x64xf32>, i32 -> vector<16x64xf32>
    %cst_8 = arith.constant 0.000000e+00 : f32
    %18 = vector.broadcast %cst_8 : f32 to vector<16x64xf32>
    %19 = arith.select %16, %17, %18 : vector<16x64xi1>, vector<16x64xf32>
    %20 = tpu.concatenate %14, %8, %19 in 1 : vector<16x64xf32>, vector<16x64xf32>, vector<16x64xf32> -> vector<16x192xf32>
    %c0_9 = arith.constant 0 : index
    %c0_10 = arith.constant 0 : index
    %21 = vector.load %arg3[%c0_9, %c0_10] : memref<192x128xf32, #tpu.memory_space<vmem>>, vector<192x128xf32>
    %cst_11 = arith.constant dense<0.000000e+00> : vector<16x128xf32>
    %22 = tpu.matmul %20, %21, %cst_11 {dimension_numbers = #tpu.dot_dimension_numbers<[1], [0], [0], [1], [0, 0, 1, 1], [], []>} : vector<16x192xf32>, vector<192x128xf32>, vector<16x128xf32> -> vector<16x128xf32>
    %c0_12 = arith.constant 0 : index
    %c0_13 = arith.constant 0 : index
    %23 = vector.load %arg5[%c0_12, %c0_13] : memref<1x128xf32, #tpu.memory_space<vmem>>, vector<1x128xf32>
    %24 = vector.broadcast %23 : vector<1x128xf32> to vector<16x128xf32>
    %25 = arith.addf %22, %24 : vector<16x128xf32>
    %cst_14 = arith.constant 1.000000e-01 : f32
    %26 = vector.broadcast %cst_14 : f32 to vector<16x128xf32>
    %27 = arith.mulf %26, %25 : vector<16x128xf32>
    %28 = arith.maximumf %25, %27 : vector<16x128xf32>
    %c0_15 = arith.constant 0 : index
    %c0_16 = arith.constant 0 : index
    %29 = vector.load %arg1[%c0_15, %c0_16] : memref<16x128xf32, #tpu.memory_space<vmem>>, vector<16x128xf32>
    %30 = arith.addf %28, %29 : vector<16x128xf32>
    %c0_17 = arith.constant 0 : index
    %c0_18 = arith.constant 0 : index
    %31 = vector.load %arg6[%c0_17, %c0_18] : memref<16x128xf32, #tpu.memory_space<vmem>>, vector<16x128xf32>
    tpu.vector_store %arg6[%c0_17, %c0_18], %30 {strides = array<i32>} : memref<16x128xf32, #tpu.memory_space<vmem>>, vector<16x128xf32>,
    return
  }
  func.func @transform_0(%arg0: i32) -> (i32, i32) {
    %c0_i32 = arith.constant 0 : i32
    %c0_i32_0 = arith.constant 0 : i32
    return %arg0, %c0_i32 : i32, i32
  }
  func.func @transform_1(%arg0: i32) -> (i32, i32) {
    %c0_i32 = arith.constant 0 : i32
    %c0_i32_0 = arith.constant 0 : i32
    %c0_i32_1 = arith.constant 0 : i32
    return %c0_i32, %c0_i32_0 : i32, i32
  }
  func.func @transform_2(%arg0: i32) -> (i32, i32) {
    %c0_i32 = arith.constant 0 : i32
    %c0_i32_0 = arith.constant 0 : i32
    %c0_i32_1 = arith.constant 0 : i32
    return %c0_i32, %c0_i32_0 : i32, i32
  }
  func.func @transform_3(%arg0: i32) -> (i32, i32) {
    %c0_i32 = arith.constant 0 : i32
    %c0_i32_0 = arith.constant 0 : i32
    %c0_i32_1 = arith.constant 0 : i32
    return %c0_i32, %c0_i32_0 : i32, i32
  }
  func.func @transform_4(%arg0: i32) -> (i32, i32) {
    %c0_i32 = arith.constant 0 : i32
    %c0_i32_0 = arith.constant 0 : i32
    %c0_i32_1 = arith.constant 0 : i32
    return %c0_i32, %c0_i32_0 : i32, i32
  }
  func.func @transform_5(%arg0: i32) -> (i32, i32) {
    %c0_i32 = arith.constant 0 : i32
    %c0_i32_0 = arith.constant 0 : i32
    return %arg0, %c0_i32 : i32, i32
  }
}

</mosaic_0001>

<bundles_post_ra>
// kernel: tpu_custom_call.1
= control target key start
LH: loop header
LB: loop body
LE: loop exit
PB: predicated region body
PF: predicated region fallthrough
CT: control target
= control target key end

     0   :  { %10 = vsyncpa [#allocation3], 0  ;;  %s1169_s0 = inlined_call_operand.hbm [shape: f32[32,128], index: 0, kind: input, shape index: {}]   ;;  %s1170_s1 = inlined_call_operand.vmem [shape: f32[128,64], index: 1, kind: input, shape index: {}]   ;;  %s1171_s2 = inlined_call_operand.vmem [shape: f32[192,128], index: 2, kind: input, shape index: {}]   ;;  %s1172_s3 = inlined_call_operand.vmem [shape: f32[1,64], index: 3, kind: input, shape index: {}]   ;;  %s1173_s4 = inlined_call_operand.vmem [shape: f32[1,128], index: 4, kind: input, shape index: {}]   ;;  %s1174_s5 = inlined_call_operand.hbm [shape: f32[32,128], index: 5, kind: output, shape index: {}]  }
   0x1   :  { %12 = vsyncpa [#allocation3 + $0x1], 0 }
   0x2   :  { %13 = vsyncpa [#allocation4], 0 }
   0x3   :  { %15 = vsyncpa [#allocation4 + $0x1], 0  ;;  %s845_s18 = smov 0   ;;  %s847_s19 = smov 0  }
   0x4   :  { %s849_s20 = smov 0   ;;  %s851_s21 = smov 0  }
   0x5 LB: > { %s866_s22 = sadd.s32 4294967295, %s805_s21   ;;  %s588_s23 = sadd.s32 4294967294, %s805_s21   ;;  %s805_s21 = sphi %s851_s21, %s1189_s21   ;;  %s801_s20 = sphi %s849_s20, %s1188_s20   ;;  %s797_s19 = sphi %s847_s19, %s1187_s19   ;;  %s793_s18 = sphi %s845_s18, %s1186_s18  }
   0x6   : > { %s870_s24 = sadd.s32 1, %s805_s21   ;;  %s28_s25 = sadd.s32 1, %s801_s20 }
   0x7   : > { %s25_s26 = ssub.s32 %s805_s21, %s870_s24  ;;  %p35_p0 = scmp.ne.s32.totalorder %s801_s20, %s797_s19 }
   0x8   : > { %p26_p1 = scmp.eq.s32.totalorder %s25_s26, 0  ;;  %p36_p2 = scmp.eq.s32.totalorder %s805_s21, 0 }
   0x9   : > { %p41_p3 = scmp.ne.s32.totalorder %s797_s19, %s793_s18  ;;  %p42_p4 = scmp.eq.s32.totalorder %s866_s22, 0 }
   0xa   : > { %s882_s27 = scalar_select %p26_p1, %s801_s20, %s28_s25  }
   0xb   : > { %p884_p5 = por %p36_p2, %p35_p0  ;;  %p888_p6 = por %p42_p4, %p41_p3 }
   0xc   : > { %p149_p7 = scmp.eq.s32.totalorder %s866_s22, 1  ;;  %p155_p8 = scmp.eq.s32.totalorder %s588_s23, 1 }
   0xd   : > { %s1178_s29 = scalar_select %p888_p6, 1, 0 }
   0xe   : > { %p673_p10 = scmp.lt.s32.totalorder %s805_s21, 2  ;;  %p895_p11 = por %p149_p7, %p35_p0 }
   0xf   : > { %p899_p12 = por %p155_p8, %p41_p3  ;;  %s187_s7 = sand.u32 1, %s801_s20  }
  0x10   : > { %s1179_s30 = scalar_select %p895_p11, 1, 0 }
  0x11   : > { %s1180_s6 = scalar_select %p899_p12, 1, 0 }
  0x12   : > { %s606_s8 = sshll.u32 %s805_s21, 8  ;;  %s591_s9 = sshll.u32 %s187_s7, 4 }
  0x13   : > { %s908_s12 = scalar_lea.hbm %s1169_s0, %s606_s8  ;;  %s191_s13 = scalar_lea.vmem [#allocation2], %s591_s9 }
  0x14   : > { %s198_s14 = sshll.u32 %s191_s13, 4  ;;  %p912_p13 = pnand %p673_p10, %p884_p5  ;;  %s916_s14 = int_to_ptr.vmem [resolvable:$true] %s198_s14 }
  0x15   : > { %s918_s16 = scalar_lea.sflag [#allocation3], %s187_s7  ;;  %s713_s17 = scalar_lea.hbm %s908_s12, 256 }
  0x16   : > { %p714_p0 = scmp.ne.s32.totalorder %s908_s12, %s713_s17  ;;  %p715_p1 = pneg %p912_p13 }
  0x17   : > { %s718_s26 = scalar_lea.hbm %s1169_s0, 512  ;;  %p719_p4 = scmp.lt.s32.totalorder %s908_s12, %s1169_s0 }
  0x18   : > { %p716_p2 = pnand %p715_p1, %p714_p0  ;;  %p720_p5 = scmp.lt.s32.totalorder %s718_s26, %s713_s17 }
  0x1a   : > { %p717_p3 = pneg %p716_p2  ;;  %p721_p7 = por %p720_p5, %p719_p4 }
  0x1c   : > { %p722_p8 = pnand %p721_p7, %p717_p3 }
  0x1e   : > { %725 = shalt.err (!%p722_p8)
}
  0x1f   : > { %s726_s7 = scalar_lea.vmem %s916_s14, 256  ;;  %s807_s9 = smov [#allocation2]  }
  0x20   : > { %p727_p10 = scmp.ne.s32.totalorder %s916_s14, %s726_s7  ;;  %s731_s10 = sshll.u32 %s807_s9, 4  ;;  %s732_s10 = int_to_ptr.vmem [resolvable:$false] %s731_s10 }
  0x21   : > { %s733_s11 = scalar_lea.vmem %s732_s10, 512  ;;  %p734_p2 = scmp.lt.s32.totalorder %s916_s14, %s732_s10 }
  0x22   : > { %p729_p9 = pnand %p727_p10, %p715_p1  ;;  %p735_p12 = scmp.lt.s32.totalorder %s733_s11, %s726_s7 }
  0x24   : > { %p730_p0 = pneg %p729_p9  ;;  %p736_p11 = por %p735_p12, %p734_p2 }
  0x26   : > { %p737_p6 = pnand %p736_p11, %p730_p0 }
  0x28   : > { %740 = shalt.err (!%p737_p6)
}
  0x29   : > { %s808_s13 = smov 128   ;;  %s809_s17 = smov 8  }
  0x2a   : > { %668 = dma.hbm_to_vmem [thread:$0]  (!%p912_p13), %s908_s12, 256, %s916_s14, %s918_s16, %s808_s13, %s808_s13, %s809_s17  }
  0x2b   : > { %p594_p9 = scmp.ge.s32.totalorder %s805_s21, 1  ;;  %p206_p1 = scmp.lt.s32.totalorder %s805_s21, 3 }
  0x2d   : > { %p207_p3 = pnand %p594_p9, %p206_p1 }
  0x2e   : > { %s942_s23 = sand.u32 (!%p207_p3), 1, %s797_s19   ;;  %p1182_p6 = scmp.ne.s32.totalorder (!%p207_p3), %s1178_s29, 0 }
  0x2f   : > { %210 = sbr.rel (%p207_p3) target bundleno = 622 (0x26e), region = 40  ;;  %s595_s25 = sshll.u32 (!%p207_p3), %s942_s23, 4 }
  0x30   : > { %s213_s26 = scalar_lea.sflag (!%p207_p3), [#allocation3], %s942_s23  ;;  %s948_s28 = scalar_lea.vmem (!%p207_p3), [#allocation2], %s595_s25 }
  0x34   : > { %784 = dma.done.wait (%p1182_p6), %s213_s26, 256  }
  0x35   : > { %786 = vsyncadd (%p1182_p6), %s213_s26, 4294967040  ;;  %v262_v0 = vld [vmem:[%s1170_s1 + $0x78] sm:$0xff]  ;;  %v261_v1 = vld [vmem:[%s1170_s1 + $0x70] sm:$0xff]  ;;  %v810_v19 = vmov 0.0   ;;  %v349_v43 = vlaneseq  ;;  %vm378_vm1 = vcmask 523264   ;;  %s811_s12 = smov 64  }
  0x36   : > { %626 = vmatprep.subr.mxu0 %v262_v0  ;;  %v260_v2 = vld [vmem:[%s1170_s1 + $0x68] sm:$0xff]  ;;  %v259_v3 = vld [vmem:[%s1170_s1 + $0x60] sm:$0xff]  ;;  %v258_v5 = vld [vmem:[%s1170_s1 + $0x58] sm:$0xff]  ;;  %418 = vmatprep.subr.mxu1 %v810_v19  ;;  %s242_s16 = scalar_lea.vmem [#allocation5], %s595_s25  ;;  %s607_s7 = sshll.u32 %s866_s22, 8 }
  0x37   : > { %627 = vmatpush3.msra.mxu0 %v262_v0  ;;  %v967_v4 = vld [vmem:[%s948_s28] sm:$0xff]  ;;  %v256_v7 = vld [vmem:[%s1170_s1 + $0x48] sm:$0xff]  ;;  %v254_v9 = vld [vmem:[%s1170_s1 + $0x38] sm:$0xff]  ;;  %v350_v46 = vshrl.u32 %v349_v43, 7  ;;  %s515_s8 = sshll.u32 %s242_s16, 4  ;;  %s1125_s10 = scalar_lea.hbm %s1174_s5, %s607_s7  ;;  %s1120_s8 = int_to_ptr.vmem [resolvable:$true] %s515_s8 }
  0x38   : > { %628 = vmatprep.subr.mxu0 %v261_v1  ;;  %658 = vmatprep.mubr.f32.mxu0 %v967_v4  ;;  %v257_v6 = vld [vmem:[%s1170_s1 + $0x50] sm:$0xff]  ;;  %v255_v8 = vld [vmem:[%s1170_s1 + $0x40] sm:$0xff]  ;;  %v252_v11 = vld [vmem:[%s1170_s1 + $0x28] sm:$0xff]  ;;  %s502_s25 = scalar_lea.sflag [#allocation4], %s942_s23  ;;  %s741_s11 = scalar_lea.vmem %s1120_s8, 256 }
  0x39   : > { %629 = vmatpush3.msra.mxu0 %v261_v1  ;;  %v253_v10 = vld [vmem:[%s1170_s1 + $0x30] sm:$0xff]  ;;  %v251_v12 = vld [vmem:[%s1170_s1 + $0x20] sm:$0xff]  ;;  %v250_v13 = vld [vmem:[%s1170_s1 + $0x18] sm:$0xff]  ;;  %v351_v51 = vadd.s32 8, %v350_v46  ;;  %vm365_vm0 = vcmp.lt.s32.totalorder %v350_v46, 7  ;;  %vm352_vm2 = vcmp.gt.s32.totalorder %v350_v46, 0  ;;  %p742_p11 = scmp.ne.s32.totalorder %s1120_s8, %s741_s11 }
  0x3a   : > { %630 = vmatprep.subr.mxu0 %v260_v2  ;;  %v249_v14 = vld [vmem:[%s1170_s1 + $0x10] sm:$0xff]  ;;  %v248_v15 = vld [vmem:[%s1170_s1 + $0x8] sm:$0xff]  ;;  %v247_v16 = vld [vmem:[%s1170_s1] sm:$0xff]  ;;  %vm356_vm3 = vcmp.lt.s32.totalorder %v350_v46, 1  ;;  %p1183_p12 = scmp.ne.s32.totalorder %s1179_s30, 0  ;;  %s812_s22 = smov [#allocation5]  }
  0x3b   : > { %631 = vmatpush3.msra.mxu0 %v260_v2  ;;  %v1007_v17 = vld [vmem:[%s948_s28 + $0x8] sm:$0xff]  ;;  %v395_v20 = vld [vmem:[%s1171_s2 + $0x70] sm:$0xff]  ;;  %v393_v22 = vld [vmem:[%s1171_s2 + $0x60] sm:$0xff]  ;;  %vm362_vm4 = vcmp.lt.s32.totalorder %v351_v51, 15  ;;  %s745_s28 = sshll.u32 %s812_s22, 4  ;;  %s746_s28 = int_to_ptr.vmem [resolvable:$false] %s745_s28 }
  0x3c   : > { %632 = vmatprep.subr.mxu0 %v259_v3  ;;  %v396_v18 = vld [vmem:[%s1171_s2 + $0x78] sm:$0xff]  ;;  %v394_v21 = vld [vmem:[%s1171_s2 + $0x68] sm:$0xff]  ;;  %v391_v24 = vld [vmem:[%s1171_s2 + $0x50] sm:$0xff]  ;;  %p743_p13 = pnand %p742_p11, %p1183_p12  ;;  %s747_s13 = scalar_lea.vmem %s746_s28, 512 }
  0x3d   : > { %633 = vmatpush3.msra.mxu0 %v259_v3  ;;  %419 = vmatpush1.msra.mxu1 %v396_v18  ;;  %v392_v23 = vld [vmem:[%s1171_s2 + $0x58] sm:$0xff]  ;;  %v390_v25 = vld [vmem:[%s1171_s2 + $0x48] sm:$0xff]  ;;  %v389_v26 = vld [vmem:[%s1171_s2 + $0x40] sm:$0xff]  ;;  %p748_p5 = scmp.lt.s32.totalorder %s1120_s8, %s746_s28  ;;  %p749_p7 = scmp.lt.s32.totalorder %s747_s13, %s741_s11 }
  0x3e   : > { %634 = vmatprep.subr.mxu0 %v258_v5  ;;  %420 = vmatprep.subr.mxu1 %v810_v19  ;;  %v388_v27 = vld [vmem:[%s1171_s2 + $0x38] sm:$0xff]  ;;  %v387_v28 = vld [vmem:[%s1171_s2 + $0x30] sm:$0xff]  ;;  %v386_v29 = vld [vmem:[%s1171_s2 + $0x28] sm:$0xff]  ;;  %p744_p4 = pneg %p743_p13 }
  0x3f   : > { %635 = vmatpush3.msra.mxu0 %v258_v5  ;;  %421 = vmatpush1.msra.mxu1 %v395_v20  ;;  %v385_v30 = vld [vmem:[%s1171_s2 + $0x20] sm:$0xff]  ;;  %v384_v31 = vld [vmem:[%s1171_s2 + $0x18] sm:$0xff]  ;;  %v383_v32 = vld [vmem:[%s1171_s2 + $0x10] sm:$0xff]  ;;  %p750_p8 = por %p749_p7, %p748_p5 }
  0x40   : > { %636 = vmatprep.subr.mxu0 %v257_v6  ;;  %422 = vmatprep.subr.mxu1 %v810_v19  ;;  %v382_v33 = vld [vmem:[%s1171_s2 + $0x8] sm:$0xff]  ;;  %v381_v34 = vld [vmem:[%s1171_s2] sm:$0xff]  ;;  %v404_v35 = vld [vmem:[%s1171_s2 + $0xb8] sm:$0xff] }
  0x41   : > { %637 = vmatpush3.msra.mxu0 %v257_v6  ;;  %423 = vmatpush1.msra.mxu1 %v394_v21  ;;  %v403_v36 = vld [vmem:[%s1171_s2 + $0xb0] sm:$0xff]  ;;  %v402_v37 = vld [vmem:[%s1171_s2 + $0xa8] sm:$0xff]  ;;  %v401_v38 = vld [vmem:[%s1171_s2 + $0xa0] sm:$0xff]  ;;  %p751_p10 = pnand %p750_p8, %p744_p4 }
  0x42   : > { %638 = vmatprep.subr.mxu0 %v256_v7  ;;  %424 = vmatprep.subr.mxu1 %v810_v19  ;;  %v400_v39 = vld [vmem:[%s1171_s2 + $0x98] sm:$0xff]  ;;  %v399_v40 = vld [vmem:[%s1171_s2 + $0x90] sm:$0xff]  ;;  %v398_v41 = vld [vmem:[%s1171_s2 + $0x88] sm:$0xff] }
  0x43   : > { %639 = vmatpush3.msra.mxu0 %v256_v7  ;;  %425 = vmatpush1.msra.mxu1 %v393_v22  ;;  %v397_v42 = vld [vmem:[%s1171_s2 + $0x80] sm:$0xff] }
  0x44   : > { %640 = vmatprep.subr.mxu0 %v255_v8  ;;  %426 = vmatprep.subr.mxu1 %v810_v19  ;;  %v597_v44 = vld [vmem:[%s1172_s3] ss:$0 sm:$0xff] }
  0x45   : > { %641 = vmatpush3.msra.mxu0 %v255_v8  ;;  %427 = vmatpush1.msra.mxu1 %v392_v23  ;;  %v598_v6 = vld [vmem:[%s1173_s4] ss:$0 sm:$0xff] }
  0x46   : > { %642 = vmatprep.subr.mxu0 %v254_v9  ;;  %428 = vmatprep.subr.mxu1 %v810_v19 }
  0x47   : > { %643 = vmatpush3.msra.mxu0 %v254_v9  ;;  %429 = vmatpush1.msra.mxu1 %v391_v24 }
  0x48   : > { %644 = vmatprep.subr.mxu0 %v253_v10  ;;  %430 = vmatprep.subr.mxu1 %v810_v19 }
  0x49   : > { %645 = vmatpush3.msra.mxu0 %v253_v10  ;;  %431 = vmatpush1.msra.mxu1 %v390_v25 }
  0x4a   : > { %646 = vmatprep.subr.mxu0 %v252_v11  ;;  %432 = vmatprep.subr.mxu1 %v810_v19 }
  0x4b   : > { %647 = vmatpush3.msra.mxu0 %v252_v11  ;;  %433 = vmatpush1.msra.mxu1 %v389_v26 }
  0x4c   : > { %648 = vmatprep.subr.mxu0 %v251_v12  ;;  %434 = vmatprep.subr.mxu1 %v810_v19 }
  0x4d   : > { %649 = vmatpush3.msra.mxu0 %v251_v12  ;;  %435 = vmatpush1.msra.mxu1 %v388_v27 }
  0x4e   : > { %650 = vmatprep.subr.mxu0 %v250_v13  ;;  %436 = vmatprep.subr.mxu1 %v810_v19 }
  0x4f   : > { %651 = vmatpush3.msra.mxu0 %v250_v13  ;;  %437 = vmatpush1.msra.mxu1 %v387_v28 }
  0x50   : > { %652 = vmatprep.subr.mxu0 %v249_v14  ;;  %438 = vmatprep.subr.mxu1 %v810_v19 }
  0x51   : > { %653 = vmatpush3.msra.mxu0 %v249_v14  ;;  %439 = vmatpush1.msra.mxu1 %v386_v29 }
  0x52   : > { %654 = vmatprep.subr.mxu0 %v248_v15  ;;  %440 = vmatprep.subr.mxu1 %v810_v19 }
  0x53   : > { %655 = vmatpush3.msra.mxu0 %v248_v15  ;;  %441 = vmatpush1.msra.mxu1 %v385_v30 }
  0x54   : > { %656 = vmatprep.subr.mxu0 %v247_v16  ;;  %442 = vmatprep.subr.mxu1 %v810_v19 }
  0x55   : > { %657 = vmatpush3.msra.mxu0 %v247_v16  ;;  %443 = vmatpush1.msra.mxu1 %v384_v31 }
  0x56   : > { %659 = vmatmul.mubr.f32.vlgmr.msra.gmra.mxu0 %v1007_v17  ;;  %444 = vmatprep.subr.mxu1 %v810_v19 }
  0x57   : > { %445 = vmatpush1.msra.mxu1 %v383_v32 }
  0x58   : > { %446 = vmatprep.subr.mxu1 %v810_v19 }
  0x59   : > { %447 = vmatpush1.msra.mxu1 %v382_v33 }
  0x5a   : > { %448 = vmatprep.subr.mxu1 %v810_v19 }
  0x5b   : > { %449 = vmatpush1.msra.mxu1 %v381_v34 }
  0x5c   : > { %466 = vmatprep.subr.mxu1 %v810_v19 }
  0x5d   : > { %467 = vmatpush2.msra.mxu1 %v404_v35 }
  0x5e   : > { %468 = vmatprep.subr.mxu1 %v810_v19 }
  0x5f   : > { %469 = vmatpush2.msra.mxu1 %v403_v36 }
  0x60   : > { %470 = vmatprep.subr.mxu1 %v810_v19 }
  0x61   : > { %471 = vmatpush2.msra.mxu1 %v402_v37 }
  0x62   : > { %472 = vmatprep.subr.mxu1 %v810_v19 }
  0x63   : > { %473 = vmatpush2.msra.mxu1 %v401_v38 }
  0x64   : > { %474 = vmatprep.subr.mxu1 %v810_v19 }
  0x65   : > { %475 = vmatpush2.msra.mxu1 %v400_v39 }
  0x66   : > { %476 = vmatprep.subr.mxu1 %v810_v19 }
  0x67   : > { %477 = vmatpush2.msra.mxu1 %v399_v40 }
  0x68   : > { %478 = vmatprep.subr.mxu1 %v810_v19 }
  0x69   : > { %479 = vmatpush2.msra.mxu1 %v398_v41 }
  0x6a   : > { %480 = vmatprep.subr.mxu1 %v810_v19 }
  0x6b   : > { %481 = vmatpush2.msra.mxu1 %v397_v42 }
 0x116   : > { %v660_v45 = vpop.f32.mrf.mxu0 }
 0x117   : > { %v342_v47 = vadd.f32 %v660_v45, %v597_v44 }
 0x118   : > { %v336_v48 = vpop.f32.mrf.mxu0 }
 0x119   : > { %v346_v49 = vmul.f32 0.1, %v342_v47  ;;  %v337_v50 = vadd.f32 %v597_v44, %v336_v48 }
 0x11b   : > { %v348_v52 = vmax.f32 %v342_v47, %v346_v49  ;;  %v345_v53 = vmul.f32 0.1, %v337_v50 }
 0x11d   : > { %v347_v54 = vmax.f32 %v337_v50, %v345_v53  ;;  %v355_v55 = vrot.slane %v348_v52, 7  ;;  %v364_v58 = vrot.slane %v348_v52, 1 }
 0x11f   : > { %v354_v56 = vrot.slane %v347_v54, 7  ;;  %372 = vrot.lane.b32.xlu0 %v347_v54, %s811_s12  ;;  %v363_v57 = vrot.slane %v347_v54, 1 }
 0x121   : > { %v366_v59 = vsel %vm365_vm0, %v363_v57, %v364_v58  ;;  %v358_v60 = vsel %vm356_vm3, %v355_v55, %v354_v56  ;;  %v367_v61 = vsel %vm365_vm0, %v364_v58, %v363_v57  ;;  %v357_v62 = vsel %vm356_vm3, %v354_v56, %v355_v55 }
 0x122   : > { %599 = vmatprep.mubr.msk.f32.mxu1 %vm378_vm1, %v366_v59  ;;  %v359_v63 = vsel %vm352_vm2, %v358_v60, 0.0  ;;  %v369_v0 = vsel %vm362_vm4, %v367_v61, 0.0 }
 0x123   : > { %374 = vrot.lane.b32.xlu0 %v348_v52, %s811_s12 }
 0x191   : > { %v373_v1 = vpop.permute.xlu0 %372 }
 0x192   : > { %v379_v2 = vsel %vm378_vm1, %v359_v63, %v373_v1 }
 0x193   : > { %483 = vmatmul.mubr.f32.vlgmr.msra.gmra.mxu1 %v379_v2 }
 0x194   : > { %600 = vmatprep.mubr.msk.f32.mxu1 %vm378_vm1, %v369_v0 }
 0x195   : > { %v375_v3 = vpop.permute.xlu0 %374 }
 0x196   : > { %v380_v5 = vsel %vm378_vm1, %v357_v62, %v375_v3 }
 0x197   : > { %488 = vmatmul.mubr.f32.gmra.mxu1 %v380_v5 }
 0x253   : > { %v484_v7 = vpop.f32.mrf.mxu1 }
 0x254   : > { %v485_v8 = vadd.f32 %v598_v6, %v484_v7 }
 0x255   : > { %v486_v9 = vpop.f32.mrf.mxu1 }
 0x256   : > { %v493_v10 = vmul.f32 0.1, %v485_v8 }
 0x257   : > { %v489_v11 = vpop.f32.mrf.mxu1 }
 0x258   : > { %v495_v12 = vmax.f32 %v485_v8, %v493_v10  ;;  %v490_v13 = vadd.f32 %v598_v6, %v489_v11 }
 0x259   : > { %v491_v14 = vpop.f32.mrf.mxu1 }
 0x25a   : > { %v497_v15 = vadd.f32 %v495_v12, %v967_v4  ;;  %v494_v16 = vmul.f32 0.1, %v490_v13 }
 0x25c   : > { %499 = vst [vmem:[%s242_s16] sm:$0xff] %v497_v15  ;;  %v496_v18 = vmax.f32 %v490_v13, %v494_v16 }
 0x25e   : > { %v498_v19 = vadd.f32 %v496_v18, %v1007_v17 }
 0x260   : > { %500 = vst [vmem:[%s242_s16 + $0x8] sm:$0xff] %v498_v19 }
 0x261   : > { %754 = shalt.err (!%p751_p10)
}
 0x262   : > { %s755_s17 = scalar_lea.hbm %s1125_s10, 256  ;;  %s759_s14 = scalar_lea.hbm %s1174_s5, 512 }
 0x263   : > { %p756_p0 = scmp.ne.s32.totalorder %s1125_s10, %s755_s17  ;;  %p760_p1 = scmp.lt.s32.totalorder %s1125_s10, %s1174_s5 }
 0x264   : > { %p761_p3 = scmp.lt.s32.totalorder %s759_s14, %s755_s17 }
 0x265   : > { %p757_p2 = pnand %p756_p0, %p1183_p12 }
 0x266   : > { %p762_p6 = por %p761_p3, %p760_p1 }
 0x267   : > { %p758_p9 = pneg %p757_p2 }
 0x269   : > { %p763_p11 = pnand %p762_p6, %p758_p9 }
 0x26b   : > { %766 = shalt.err (!%p763_p11)
}
 0x26c   : > { %s813_s7 = smov 128   ;;  %s814_s9 = smov 8  }
 0x26d   : > { %663 = dma.vmem_to_hbm [thread:$0]  (%p1183_p12), %s1120_s8, 256, %s1125_s10, %s502_s25, %s813_s7, %s813_s7, %s814_s9  }
 0x26e PF: > { %s530_s29 = sand.u32 1, %s793_s18   ;;  %p1184_p13 = scmp.ne.s32.totalorder %s1180_s6, 0 }
 0x26f   : > { %p1185_p4 = scmp.ge.s32.totalorder %s805_s21, 2  ;;  %s531_s11 = scalar_lea.sflag [#allocation4], %s530_s29 }
 0x271   : > { %p670_p5 = pnand %p1185_p4, %p1184_p13 }
 0x273   : > { %p671_p7 = pneg %p670_p5 }
 0x275   : > { %788 = dma.done.wait (%p671_p7), %s531_s11, 256  }
 0x276   : > { %790 = vsyncadd (%p671_p7), %s531_s11, 4294967040  ;;  %p18_p8 = scmp.ge.s32.totalorder %s870_s24, 4   ;;  %s1186_s18 = smov %s797_s19 }
 0x277   : > { %s1187_s19 = smov %s801_s20  ;;  %s1188_s20 = smov %s882_s27 }
 0x278   : > { %s1189_s21 = smov %s870_s24  ;;  %20 = sbr.rel (!%p18_p8) target bundleno = 5 (0x5), region = 85 }
 0x27d   :  { %536 = vsyncpa [#allocation3], 1 }
 0x27e   :  { %538 = vsyncpa [#allocation3 + $0x1], 1 }
 0x27f   :  { %539 = vsyncpa [#allocation4], 1 }
 0x280   :  { %541 = vsyncpa [#allocation4 + $0x1], 1 }

</bundles_post_ra>
